<compile_context>
chip_gen: v6e
topology: v6e:2x2x1
jax: 0.10.0
libtpu: 0.0.40
codegen_flags: <defaults>
</compile_context>

<pallas_src>
import functools
import numpy as np
import jax
import jax.numpy as jnp
from jax import lax
from jax.experimental import pallas as pl
from jax.experimental.pallas import tpu as pltpu

# ---------------- small deterministic configuration -------------------------
N_FFT = 32
N_HOP = 8
N_BINS = N_FFT // 2 + 1          # onesided bins = 17
NB_SAMPLES = 2
NB_CHANNELS = 2
NB_TIMESTEPS = 64
NB_TARGETS = 2
LANE = 128                       # TPU lane width; every slab is 128-aligned
B = NB_SAMPLES * NB_CHANNELS     # 4 real batch rows
B_PAD = 8                        # padded to one sublane group (8-row alignment)


# ------------------------------ fused kernel --------------------------------
def _separator_fused_kernel(xpad_ref, dft_ref, wmask_ref, ivrs_ref, invw_ref,
                            out_ref, *, n_frames):
    # xpad_ref : (B_PAD, LANE)     reflect-padded audio, rows/lanes zero-padded
    # dft_ref  : (N_FFT, 2*LANE)   hann-folded DFT basis: [cos |0| -sin |0]
    # wmask_ref: (LANE, 2*LANE)    mask models:           [W_t0 |0| W_t1 |0]
    # ivrs_ref : (2*LANE, LANE)    hann-folded IDFT basis: [icos ;0; isin ;0]
    # invw_ref : (1, LANE)         precomputed 1/sum(win^2) OLA envelope
    # out_ref  : (NB_TARGETS*B_PAD, LANE)  rows = target-major, batch-minor

    # ---- in-kernel STFT framing: overlapping windows sliced from VMEM ----
    xp = xpad_ref[...]                                           # (8, 128), 1 vreg
    fr = jnp.concatenate(
        [xp[:, f * N_HOP:f * N_HOP + N_FFT] for f in range(n_frames)],
        axis=0)                                                  # (n_frames*8, 32)

    # ---- STFT: one MXU dot yields [re | im] in 128-lane slabs ----
    reim = jnp.dot(fr, dft_ref[...],
                   preferred_element_type=jnp.float32)           # (72, 256)
    re = reim[:, :LANE]                                          # whole-vreg slab
    im = reim[:, LANE:]

    # ---- ComplexNorm + mixture phase: rsqrt on EUP; re/im/p/r die here ----
    p = re * re + im * im
    nz = p > 0.0
    r = lax.rsqrt(jnp.where(nz, p, 1.0))
    cos_a = jnp.where(nz, re * r, 1.0)                           # atan2(0,0) -> cos=1
    sin_a = jnp.where(nz, im * r, 0.0)                           #              sin=0
    mag = p * r                                                  # |X| (0 in pad lanes)

    # ---- synthetic target models: both targets in one ReLU-linear dot ----
    spec = jnp.maximum(jnp.dot(mag, wmask_ref[...],
                               preferred_element_type=jnp.float32), 0.0)
    spec0 = spec[:, :LANE]
    spec1 = spec[:, LANE:]

    # ---- wiener(niter=0) + ISTFT: one dot per target, cos/sin stacked on K.
    #      RHS columns already sit at lane offset 0 of a 128-wide slab, so the
    #      result is lane-dense and only needs an XLU roll for placement. ----
    t0 = jnp.dot(jnp.concatenate([spec0 * cos_a, spec0 * sin_a], axis=1),
                 ivrs_ref[...], preferred_element_type=jnp.float32)  # (72, 128)
    t1 = jnp.dot(jnp.concatenate([spec1 * cos_a, spec1 * sin_a], axis=1),
                 ivrs_ref[...], preferred_element_type=jnp.float32)

    # ---- overlap-add in registers: 8-row-aligned slices + static lane rolls ----
    acc0 = jnp.zeros((B_PAD, LANE), jnp.float32)
    acc1 = jnp.zeros((B_PAD, LANE), jnp.float32)
    for f in range(n_frames):                    # static trip count / offsets
        b0 = t0[f * B_PAD:(f + 1) * B_PAD, :]    # (8, 128), frame f, target 0
        b1 = t1[f * B_PAD:(f + 1) * B_PAD, :]
        if f:                                    # lanes >= 32 are zero -> roll == shift
            b0 = pltpu.roll(b0, shift=f * N_HOP, axis=1)
            b1 = pltpu.roll(b1, shift=f * N_HOP, axis=1)
        acc0 = acc0 + b0
        acc1 = acc1 + b1

    # ---- window^2 normalization (host-precomputed reciprocal) + single store ----
    out_ref[...] = jnp.concatenate([acc0, acc1], axis=0) * invw_ref[...]


# ------------------------------ parameters ----------------------------------
def init_params(key, n_frames):
    n = np.arange(N_FFT)
    f = np.arange(N_BINS)
    # hann window (periodic, as torch.hann_window default)
    win = 0.5 - 0.5 * np.cos(2.0 * np.pi * n / N_FFT)

    # forward DFT basis (onesided), analysis window folded in, 128-aligned slabs
    ang = 2.0 * np.pi * np.outer(n, f) / N_FFT                   # (N_FFT, N_BINS)
    dft_cat = np.zeros((N_FFT, 2 * LANE))
    dft_cat[:, :N_BINS] = win[:, None] * np.cos(ang)
    dft_cat[:, LANE:LANE + N_BINS] = win[:, None] * (-np.sin(ang))

    # inverse real-DFT basis (conjugate symmetry + synthesis window folded in),
    # stacked vertically [icos ; isin] so one K=256 dot does the whole ISTFT
    coef = np.where((f == 0) | (f == N_FFT // 2), 1.0, 2.0)
    iang = 2.0 * np.pi * np.outer(f, n) / N_FFT                  # (N_BINS, N_FFT)
    icos_w = (coef[:, None] * np.cos(iang) / N_FFT) * win[None, :]
    isin_w = (-coef[:, None] * np.sin(iang) / N_FFT) * win[None, :]
    ivrs = np.zeros((2 * LANE, LANE))
    ivrs[:N_BINS, :N_FFT] = icos_w
    ivrs[LANE:LANE + N_BINS, :N_FFT] = isin_w

    # window^2 overlap-add envelope -> reciprocal precomputed on host in float64
    # with the 1e-11 floor (exact division semantics, nothing to do in-kernel)
    t_ola = (n_frames - 1) * N_HOP + N_FFT
    assert t_ola <= LANE
    wnorm = np.zeros((1, LANE), np.float64)
    for fr in range(n_frames):
        wnorm[0, fr * N_HOP:fr * N_HOP + N_FFT] += win ** 2
    inv_wnorm = np.where(wnorm > 1e-11, 1.0 / np.where(wnorm > 1e-11, wnorm, 1.0), 1.0)

    # deterministic synthetic target-model weights (near-identity masks), each
    # target in its own 128-lane slab so the kernel uses one dot + free slices
    wmask = (0.5 * jnp.eye(N_BINS, dtype=jnp.float32)[None]
             + 0.05 * jax.random.normal(key, (NB_TARGETS, N_BINS, N_BINS),
                                        dtype=jnp.float32))
    wmask_cat = jnp.zeros((LANE, 2 * LANE), jnp.float32)
    wmask_cat = wmask_cat.at[:N_BINS, :N_BINS].set(wmask[0])
    wmask_cat = wmask_cat.at[:N_BINS, LANE:LANE + N_BINS].set(wmask[1])

    return {
        "dft_cat": jnp.asarray(dft_cat, jnp.float32),
        "ivrs": jnp.asarray(ivrs, jnp.float32),
        "inv_wnorm": jnp.asarray(inv_wnorm, jnp.float32),
        "wmask_cat": wmask_cat,
    }


# ------------------------------ forward -------------------------------------
def separator_forward(audio, params):
    S, C, T = audio.shape
    assert S * C == B
    pad = N_FFT // 2

    # glue: center reflect pad (torch.stft center=True); framing happens in-kernel
    sig = jnp.pad(audio.reshape(B, T), ((0, 0), (pad, pad)), mode="reflect")
    n_frames = 1 + (sig.shape[1] - N_FFT) // N_HOP
    assert sig.shape[1] <= LANE and (n_frames - 1) * N_HOP + N_FFT <= LANE
    # pad batch rows to one sublane group and lanes to 128 for one clean block
    xpad = jnp.pad(sig, ((0, B_PAD - B), (0, LANE - sig.shape[1])))

    kernel = functools.partial(_separator_fused_kernel, n_frames=n_frames)

    # single fused kernel: framing -> STFT -> masks -> wiener(0) -> ISTFT -> OLA
    out = pl.pallas_call(
        kernel,
        out_shape=jax.ShapeDtypeStruct((NB_TARGETS * B_PAD, LANE), jnp.float32),
        grid=(1,),
        in_specs=[
            pl.BlockSpec((B_PAD, LANE), lambda i: (0, 0)),
            pl.BlockSpec((N_FFT, 2 * LANE), lambda i: (0, 0)),
            pl.BlockSpec((LANE, 2 * LANE), lambda i: (0, 0)),
            pl.BlockSpec((2 * LANE, LANE), lambda i: (0, 0)),
            pl.BlockSpec((1, LANE), lambda i: (0, 0)),
        ],
        out_specs=pl.BlockSpec((NB_TARGETS * B_PAD, LANE), lambda i: (0, 0)),
        compiler_params=pltpu.CompilerParams(dimension_semantics=("arbitrary",)),
    )(xpad, params["dft_cat"], params["wmask_cat"], params["ivrs"],
      params["inv_wnorm"])

    # glue: drop padded batch rows / lanes and the center padding
    est = out.reshape(NB_TARGETS, B_PAD, LANE)[:, :B, pad:pad + T]
    est = est.reshape(NB_TARGETS, S, C, T)
    return jnp.transpose(est, (1, 0, 2, 3))         # (S, targets, C, T)


# ------------------------------ main ----------------------------------------
if __name__ == "__main__":
    key = jax.random.PRNGKey(0)
    k_audio, k_w = jax.random.split(key)
    audio = jax.random.normal(
        k_audio, (NB_SAMPLES, NB_CHANNELS, NB_TIMESTEPS), dtype=jnp.float32)

    n_frames = 1 + NB_TIMESTEPS // N_HOP
    params = init_params(k_w, n_frames)

    estimates = jax.jit(separator_forward)(audio, params)
    estimates = jax.block_until_ready(estimates)

    assert estimates.shape == (NB_SAMPLES, NB_TARGETS, NB_CHANNELS, NB_TIMESTEPS)
    assert bool(jnp.all(jnp.isfinite(estimates)))
    print("KERNEL_OK")
</pallas_src>

<mosaic_0001>
module attributes {stable_mosaic.version = 11 : i64} {
  func.func @_separator_fused_kernel(%arg0: i32, %arg1: memref<8x128xf32, #tpu.memory_space<vmem>>, %arg2: memref<32x256xf32, #tpu.memory_space<vmem>>, %arg3: memref<128x256xf32, #tpu.memory_space<vmem>>, %arg4: memref<256x128xf32, #tpu.memory_space<vmem>>, %arg5: memref<1x128xf32, #tpu.memory_space<vmem>>, %arg6: memref<16x128xf32, #tpu.memory_space<vmem>>) attributes {dimension_semantics = [#tpu.dimension_semantics<arbitrary>], iteration_bounds = array<i64: 1>, scalar_prefetch = 0 : i64, scratch_operands = 0 : i64, tpu.core_type = #tpu.core_type<tc>, window_params = [{pipeline_mode = #tpu.pipeline_mode<synchronous>, transform_indices = @transform_0, window_bounds = array<i64: 8, 128>}, {pipeline_mode = #tpu.pipeline_mode<synchronous>, transform_indices = @transform_1, window_bounds = array<i64: 32, 256>}, {pipeline_mode = #tpu.pipeline_mode<synchronous>, transform_indices = @transform_2, window_bounds = array<i64: 128, 256>}, {pipeline_mode = #tpu.pipeline_mode<synchronous>, transform_indices = @transform_3, window_bounds = array<i64: 256, 128>}, {pipeline_mode = #tpu.pipeline_mode<synchronous>, transform_indices = @transform_4, window_bounds = array<i64: 1, 128>}, {pipeline_mode = #tpu.pipeline_mode<synchronous>, transform_indices = @transform_5, window_bounds = array<i64: 16, 128>}]} {
    %c0 = arith.constant 0 : index
    %c0_0 = arith.constant 0 : index
    %0 = vector.load %arg1[%c0, %c0_0] : memref<8x128xf32, #tpu.memory_space<vmem>>, vector<8x128xf32>
    %1 = vector.extract_strided_slice %0 {offsets = [0, 0], sizes = [8, 32], strides = [1, 1]} : vector<8x128xf32> to vector<8x32xf32>
    %2 = vector.extract_strided_slice %0 {offsets = [0, 8], sizes = [8, 32], strides = [1, 1]} : vector<8x128xf32> to vector<8x32xf32>
    %3 = vector.extract_strided_slice %0 {offsets = [0, 16], sizes = [8, 32], strides = [1, 1]} : vector<8x128xf32> to vector<8x32xf32>
    %4 = vector.extract_strided_slice %0 {offsets = [0, 24], sizes = [8, 32], strides = [1, 1]} : vector<8x128xf32> to vector<8x32xf32>
    %5 = vector.extract_strided_slice %0 {offsets = [0, 32], sizes = [8, 32], strides = [1, 1]} : vector<8x128xf32> to vector<8x32xf32>
    %6 = vector.extract_strided_slice %0 {offsets = [0, 40], sizes = [8, 32], strides = [1, 1]} : vector<8x128xf32> to vector<8x32xf32>
    %7 = vector.extract_strided_slice %0 {offsets = [0, 48], sizes = [8, 32], strides = [1, 1]} : vector<8x128xf32> to vector<8x32xf32>
    %8 = vector.extract_strided_slice %0 {offsets = [0, 56], sizes = [8, 32], strides = [1, 1]} : vector<8x128xf32> to vector<8x32xf32>
    %9 = vector.extract_strided_slice %0 {offsets = [0, 64], sizes = [8, 32], strides = [1, 1]} : vector<8x128xf32> to vector<8x32xf32>
    %10 = tpu.concatenate %1, %2, %3, %4, %5, %6, %7, %8, %9 in 0 : vector<8x32xf32>, vector<8x32xf32>, vector<8x32xf32>, vector<8x32xf32>, vector<8x32xf32>, vector<8x32xf32>, vector<8x32xf32>, vector<8x32xf32>, vector<8x32xf32> -> vector<72x32xf32>
    %c0_1 = arith.constant 0 : index
    %c0_2 = arith.constant 0 : index
    %11 = vector.load %arg2[%c0_1, %c0_2] : memref<32x256xf32, #tpu.memory_space<vmem>>, vector<32x256xf32>
    %cst = arith.constant dense<0.000000e+00> : vector<72x256xf32>
    %12 = tpu.matmul %10, %11, %cst {dimension_numbers = #tpu.dot_dimension_numbers<[1], [0], [0], [1], [0, 0, 1, 1], [], []>} : vector<72x32xf32>, vector<32x256xf32>, vector<72x256xf32> -> vector<72x256xf32>
    %13 = vector.extract_strided_slice %12 {offsets = [0, 0], sizes = [72, 128], strides = [1, 1]} : vector<72x256xf32> to vector<72x128xf32>
    %14 = vector.extract_strided_slice %12 {offsets = [0, 128], sizes = [72, 128], strides = [1, 1]} : vector<72x256xf32> to vector<72x128xf32>
    %15 = arith.mulf %13, %13 : vector<72x128xf32>
    %16 = arith.mulf %14, %14 : vector<72x128xf32>
    %17 = arith.addf %15, %16 : vector<72x128xf32>
    %cst_3 = arith.constant 0.000000e+00 : f32
    %18 = vector.broadcast %cst_3 : f32 to vector<72x128xf32>
    %19 = arith.cmpf ogt, %17, %18 : vector<72x128xf32>
    %cst_4 = arith.constant 1.000000e+00 : f32
    %20 = vector.broadcast %cst_4 : f32 to vector<72x128xf32>
    %21 = arith.select %19, %17, %20 : vector<72x128xi1>, vector<72x128xf32>
    %22 = math.rsqrt %21 : vector<72x128xf32>
    %23 = arith.mulf %13, %22 : vector<72x128xf32>
    %cst_5 = arith.constant 1.000000e+00 : f32
    %24 = vector.broadcast %cst_5 : f32 to vector<72x128xf32>
    %25 = arith.select %19, %23, %24 : vector<72x128xi1>, vector<72x128xf32>
    %26 = arith.mulf %14, %22 : vector<72x128xf32>
    %cst_6 = arith.constant 0.000000e+00 : f32
    %27 = vector.broadcast %cst_6 : f32 to vector<72x128xf32>
    %28 = arith.select %19, %26, %27 : vector<72x128xi1>, vector<72x128xf32>
    %29 = arith.mulf %17, %22 : vector<72x128xf32>
    %c0_7 = arith.constant 0 : index
    %c0_8 = arith.constant 0 : index
    %30 = vector.load %arg3[%c0_7, %c0_8] : memref<128x256xf32, #tpu.memory_space<vmem>>, vector<128x256xf32>
    %cst_9 = arith.constant dense<0.000000e+00> : vector<72x256xf32>
    %31 = tpu.matmul %29, %30, %cst_9 {dimension_numbers = #tpu.dot_dimension_numbers<[1], [0], [0], [1], [0, 0, 1, 1], [], []>} : vector<72x128xf32>, vector<128x256xf32>, vector<72x256xf32> -> vector<72x256xf32>
    %cst_10 = arith.constant 0.000000e+00 : f32
    %32 = vector.broadcast %cst_10 : f32 to vector<72x256xf32>
    %33 = arith.maximumf %31, %32 : vector<72x256xf32>
    %34 = vector.extract_strided_slice %33 {offsets = [0, 0], sizes = [72, 128], strides = [1, 1]} : vector<72x256xf32> to vector<72x128xf32>
    %35 = vector.extract_strided_slice %33 {offsets = [0, 128], sizes = [72, 128], strides = [1, 1]} : vector<72x256xf32> to vector<72x128xf32>
    %36 = arith.mulf %34, %25 : vector<72x128xf32>
    %37 = arith.mulf %34, %28 : vector<72x128xf32>
    %38 = tpu.concatenate %36, %37 in 1 : vector<72x128xf32>, vector<72x128xf32> -> vector<72x256xf32>
    %c0_11 = arith.constant 0 : index
    %c0_12 = arith.constant 0 : index
    %39 = vector.load %arg4[%c0_11, %c0_12] : memref<256x128xf32, #tpu.memory_space<vmem>>, vector<256x128xf32>
    %cst_13 = arith.constant dense<0.000000e+00> : vector<72x128xf32>
    %40 = tpu.matmul %38, %39, %cst_13 {dimension_numbers = #tpu.dot_dimension_numbers<[1], [0], [0], [1], [0, 0, 1, 1], [], []>} : vector<72x256xf32>, vector<256x128xf32>, vector<72x128xf32> -> vector<72x128xf32>
    %41 = arith.mulf %35, %25 : vector<72x128xf32>
    %42 = arith.mulf %35, %28 : vector<72x128xf32>
    %43 = tpu.concatenate %41, %42 in 1 : vector<72x128xf32>, vector<72x128xf32> -> vector<72x256xf32>
    %c0_14 = arith.constant 0 : index
    %c0_15 = arith.constant 0 : index
    %44 = vector.load %arg4[%c0_14, %c0_15] : memref<256x128xf32, #tpu.memory_space<vmem>>, vector<256x128xf32>
    %cst_16 = arith.constant dense<0.000000e+00> : vector<72x128xf32>
    %45 = tpu.matmul %43, %44, %cst_16 {dimension_numbers = #tpu.dot_dimension_numbers<[1], [0], [0], [1], [0, 0, 1, 1], [], []>} : vector<72x256xf32>, vector<256x128xf32>, vector<72x128xf32> -> vector<72x128xf32>
    %cst_17 = arith.constant 0.000000e+00 : f32
    %46 = vector.broadcast %cst_17 : f32 to vector<8x128xf32>
    %cst_18 = arith.constant 0.000000e+00 : f32
    %47 = vector.broadcast %cst_18 : f32 to vector<8x128xf32>
    %48 = vector.extract_strided_slice %40 {offsets = [0, 0], sizes = [8, 128], strides = [1, 1]} : vector<72x128xf32> to vector<8x128xf32>
    %49 = vector.extract_strided_slice %45 {offsets = [0, 0], sizes = [8, 128], strides = [1, 1]} : vector<72x128xf32> to vector<8x128xf32>
    %50 = arith.addf %46, %48 : vector<8x128xf32>
    %51 = arith.addf %47, %49 : vector<8x128xf32>
    %52 = vector.extract_strided_slice %40 {offsets = [8, 0], sizes = [8, 128], strides = [1, 1]} : vector<72x128xf32> to vector<8x128xf32>
    %53 = vector.extract_strided_slice %45 {offsets = [8, 0], sizes = [8, 128], strides = [1, 1]} : vector<72x128xf32> to vector<8x128xf32>
    %c8_i32 = arith.constant 8 : i32
    %54 = tpu.dynamic_rotate %52 by %c8_i32 dim 1 : vector<8x128xf32>, i32 -> vector<8x128xf32>
    %c8_i32_19 = arith.constant 8 : i32
    %55 = tpu.dynamic_rotate %53 by %c8_i32_19 dim 1 : vector<8x128xf32>, i32 -> vector<8x128xf32>
    %56 = arith.addf %50, %54 : vector<8x128xf32>
    %57 = arith.addf %51, %55 : vector<8x128xf32>
    %58 = vector.extract_strided_slice %40 {offsets = [16, 0], sizes = [8, 128], strides = [1, 1]} : vector<72x128xf32> to vector<8x128xf32>
    %59 = vector.extract_strided_slice %45 {offsets = [16, 0], sizes = [8, 128], strides = [1, 1]} : vector<72x128xf32> to vector<8x128xf32>
    %c16_i32 = arith.constant 16 : i32
    %60 = tpu.dynamic_rotate %58 by %c16_i32 dim 1 : vector<8x128xf32>, i32 -> vector<8x128xf32>
    %c16_i32_20 = arith.constant 16 : i32
    %61 = tpu.dynamic_rotate %59 by %c16_i32_20 dim 1 : vector<8x128xf32>, i32 -> vector<8x128xf32>
    %62 = arith.addf %56, %60 : vector<8x128xf32>
    %63 = arith.addf %57, %61 : vector<8x128xf32>
    %64 = vector.extract_strided_slice %40 {offsets = [24, 0], sizes = [8, 128], strides = [1, 1]} : vector<72x128xf32> to vector<8x128xf32>
    %65 = vector.extract_strided_slice %45 {offsets = [24, 0], sizes = [8, 128], strides = [1, 1]} : vector<72x128xf32> to vector<8x128xf32>
    %c24_i32 = arith.constant 24 : i32
    %66 = tpu.dynamic_rotate %64 by %c24_i32 dim 1 : vector<8x128xf32>, i32 -> vector<8x128xf32>
    %c24_i32_21 = arith.constant 24 : i32
    %67 = tpu.dynamic_rotate %65 by %c24_i32_21 dim 1 : vector<8x128xf32>, i32 -> vector<8x128xf32>
    %68 = arith.addf %62, %66 : vector<8x128xf32>
    %69 = arith.addf %63, %67 : vector<8x128xf32>
    %70 = vector.extract_strided_slice %40 {offsets = [32, 0], sizes = [8, 128], strides = [1, 1]} : vector<72x128xf32> to vector<8x128xf32>
    %71 = vector.extract_strided_slice %45 {offsets = [32, 0], sizes = [8, 128], strides = [1, 1]} : vector<72x128xf32> to vector<8x128xf32>
    %c32_i32 = arith.constant 32 : i32
    %72 = tpu.dynamic_rotate %70 by %c32_i32 dim 1 : vector<8x128xf32>, i32 -> vector<8x128xf32>
    %c32_i32_22 = arith.constant 32 : i32
    %73 = tpu.dynamic_rotate %71 by %c32_i32_22 dim 1 : vector<8x128xf32>, i32 -> vector<8x128xf32>
    %74 = arith.addf %68, %72 : vector<8x128xf32>
    %75 = arith.addf %69, %73 : vector<8x128xf32>
    %76 = vector.extract_strided_slice %40 {offsets = [40, 0], sizes = [8, 128], strides = [1, 1]} : vector<72x128xf32> to vector<8x128xf32>
    %77 = vector.extract_strided_slice %45 {offsets = [40, 0], sizes = [8, 128], strides = [1, 1]} : vector<72x128xf32> to vector<8x128xf32>
    %c40_i32 = arith.constant 40 : i32
    %78 = tpu.dynamic_rotate %76 by %c40_i32 dim 1 : vector<8x128xf32>, i32 -> vector<8x128xf32>
    %c40_i32_23 = arith.constant 40 : i32
    %79 = tpu.dynamic_rotate %77 by %c40_i32_23 dim 1 : vector<8x128xf32>, i32 -> vector<8x128xf32>
    %80 = arith.addf %74, %78 : vector<8x128xf32>
    %81 = arith.addf %75, %79 : vector<8x128xf32>
    %82 = vector.extract_strided_slice %40 {offsets = [48, 0], sizes = [8, 128], strides = [1, 1]} : vector<72x128xf32> to vector<8x128xf32>
    %83 = vector.extract_strided_slice %45 {offsets = [48, 0], sizes = [8, 128], strides = [1, 1]} : vector<72x128xf32> to vector<8x128xf32>
    %c48_i32 = arith.constant 48 : i32
    %84 = tpu.dynamic_rotate %82 by %c48_i32 dim 1 : vector<8x128xf32>, i32 -> vector<8x128xf32>
    %c48_i32_24 = arith.constant 48 : i32
    %85 = tpu.dynamic_rotate %83 by %c48_i32_24 dim 1 : vector<8x128xf32>, i32 -> vector<8x128xf32>
    %86 = arith.addf %80, %84 : vector<8x128xf32>
    %87 = arith.addf %81, %85 : vector<8x128xf32>
    %88 = vector.extract_strided_slice %40 {offsets = [56, 0], sizes = [8, 128], strides = [1, 1]} : vector<72x128xf32> to vector<8x128xf32>
    %89 = vector.extract_strided_slice %45 {offsets = [56, 0], sizes = [8, 128], strides = [1, 1]} : vector<72x128xf32> to vector<8x128xf32>
    %c56_i32 = arith.constant 56 : i32
    %90 = tpu.dynamic_rotate %88 by %c56_i32 dim 1 : vector<8x128xf32>, i32 -> vector<8x128xf32>
    %c56_i32_25 = arith.constant 56 : i32
    %91 = tpu.dynamic_rotate %89 by %c56_i32_25 dim 1 : vector<8x128xf32>, i32 -> vector<8x128xf32>
    %92 = arith.addf %86, %90 : vector<8x128xf32>
    %93 = arith.addf %87, %91 : vector<8x128xf32>
    %94 = vector.extract_strided_slice %40 {offsets = [64, 0], sizes = [8, 128], strides = [1, 1]} : vector<72x128xf32> to vector<8x128xf32>
    %95 = vector.extract_strided_slice %45 {offsets = [64, 0], sizes = [8, 128], strides = [1, 1]} : vector<72x128xf32> to vector<8x128xf32>
    %c64_i32 = arith.constant 64 : i32
    %96 = tpu.dynamic_rotate %94 by %c64_i32 dim 1 : vector<8x128xf32>, i32 -> vector<8x128xf32>
    %c64_i32_26 = arith.constant 64 : i32
    %97 = tpu.dynamic_rotate %95 by %c64_i32_26 dim 1 : vector<8x128xf32>, i32 -> vector<8x128xf32>
    %98 = arith.addf %92, %96 : vector<8x128xf32>
    %99 = arith.addf %93, %97 : vector<8x128xf32>
    %100 = tpu.concatenate %98, %99 in 0 : vector<8x128xf32>, vector<8x128xf32> -> vector<16x128xf32>
    %c0_27 = arith.constant 0 : index
    %c0_28 = arith.constant 0 : index
    %101 = vector.load %arg5[%c0_27, %c0_28] : memref<1x128xf32, #tpu.memory_space<vmem>>, vector<1x128xf32>
    %102 = vector.broadcast %101 : vector<1x128xf32> to vector<16x128xf32>
    %103 = arith.mulf %100, %102 : vector<16x128xf32>
    %c0_29 = arith.constant 0 : index
    %c0_30 = arith.constant 0 : index
    %104 = vector.load %arg6[%c0_29, %c0_30] : memref<16x128xf32, #tpu.memory_space<vmem>>, vector<16x128xf32>
    tpu.vector_store %arg6[%c0_29, %c0_30], %103 {strides = array<i32>} : memref<16x128xf32, #tpu.memory_space<vmem>>, vector<16x128xf32>,
    return
  }
  func.func @transform_0(%arg0: i32) -> (i32, i32) {
    %c0_i32 = arith.constant 0 : i32
    %c0_i32_0 = arith.constant 0 : i32
    %c0_i32_1 = arith.constant 0 : i32
    return %c0_i32, %c0_i32_0 : i32, i32
  }
  func.func @transform_1(%arg0: i32) -> (i32, i32) {
    %c0_i32 = arith.constant 0 : i32
    %c0_i32_0 = arith.constant 0 : i32
    %c0_i32_1 = arith.constant 0 : i32
    return %c0_i32, %c0_i32_0 : i32, i32
  }
  func.func @transform_2(%arg0: i32) -> (i32, i32) {
    %c0_i32 = arith.constant 0 : i32
    %c0_i32_0 = arith.constant 0 : i32
    %c0_i32_1 = arith.constant 0 : i32
    return %c0_i32, %c0_i32_0 : i32, i32
  }
  func.func @transform_3(%arg0: i32) -> (i32, i32) {
    %c0_i32 = arith.constant 0 : i32
    %c0_i32_0 = arith.constant 0 : i32
    %c0_i32_1 = arith.constant 0 : i32
    return %c0_i32, %c0_i32_0 : i32, i32
  }
  func.func @transform_4(%arg0: i32) -> (i32, i32) {
    %c0_i32 = arith.constant 0 : i32
    %c0_i32_0 = arith.constant 0 : i32
    %c0_i32_1 = arith.constant 0 : i32
    return %c0_i32, %c0_i32_0 : i32, i32
  }
  func.func @transform_5(%arg0: i32) -> (i32, i32) {
    %c0_i32 = arith.constant 0 : i32
    %c0_i32_0 = arith.constant 0 : i32
    %c0_i32_1 = arith.constant 0 : i32
    return %c0_i32, %c0_i32_0 : i32, i32
  }
}

</mosaic_0001>

<bundles_post_ra>
// kernel: separator_forward.1
= control target key start
LH: loop header
LB: loop body
LE: loop exit
PB: predicated region body
PF: predicated region fallthrough
CT: control target
= control target key end

     0   :  { %10 = vsyncpa [#allocation3], 0  ;;  %s1555_s0 = inlined_call_operand.vmem [shape: f32[8,128], index: 0, kind: input, shape index: {}]   ;;  %s1556_s1 = inlined_call_operand.hbm [shape: f32[32,256], index: 1, kind: input, shape index: {}]   ;;  %s1557_s2 = inlined_call_operand.hbm [shape: f32[128,256], index: 2, kind: input, shape index: {}]   ;;  %s1558_s3 = inlined_call_operand.hbm [shape: f32[256,128], index: 3, kind: input, shape index: {}]   ;;  %s1559_s4 = inlined_call_operand.vmem [shape: f32[1,128], index: 4, kind: input, shape index: {}]   ;;  %s1560_s5 = inlined_call_operand.vmem [shape: f32[16,128], index: 5, kind: output, shape index: {}]  }
   0x1   :  { %11 = vsyncpa [#allocation5], 0  ;;  %s1111_s18 = smov [#allocation4]   ;;  %s1112_s20 = smov [#allocation2]  }
   0x2   :  { %s31_s19 = sshll.u32 %s1111_s18, 4  ;;  %s19_s21 = sshll.u32 %s1112_s20, 4  ;;  %s32_s19 = int_to_ptr.vmem [resolvable:$true] %s31_s19  ;;  %s20_s21 = int_to_ptr.vmem [resolvable:$true] %s19_s21 }
   0x3   :  { %s1055_s22 = scalar_lea.vmem %s32_s19, 4096  ;;  %p1060_p1 = scmp.lt.s32.totalorder %s32_s19, %s32_s19 }
   0x4   :  { %p1056_p0 = scmp.ne.s32.totalorder %s32_s19, %s1055_s22  ;;  %p1061_p2 = scmp.lt.s32.totalorder %s1055_s22, %s1055_s22 }
   0x6   :  { %p1062_p3 = por %p1061_p2, %p1060_p1 }
   0x8   :  { %p1063_p4 = pnand %p1062_p3, %p1056_p0 }
   0xa   :  { %1066 = shalt.err (!%p1063_p4)
}
   0xb   :  { %s1113_s23 = smov 256   ;;  %s1114_s24 = smov 16  }
   0xc   :  { %37 = dma.hbm_to_vmem [thread:$0]  %s1557_s2, 4096, %s32_s19, [#allocation5], %s1113_s23, %s1113_s23, %s1114_s24  }
   0xd   :  { %s1075_s27 = scalar_lea.vmem %s20_s21, 1024  ;;  %p1080_p6 = scmp.lt.s32.totalorder %s20_s21, %s20_s21 }
   0xe   :  { %p1076_p5 = scmp.ne.s32.totalorder %s20_s21, %s1075_s27  ;;  %p1081_p7 = scmp.lt.s32.totalorder %s1075_s27, %s1075_s27 }
  0x10   :  { %p1082_p8 = por %p1081_p7, %p1080_p6 }
  0x12   :  { %p1083_p9 = pnand %p1082_p8, %p1076_p5 }
  0x14   :  { %1086 = shalt.err (!%p1083_p9)
}
  0x15   :  { %25 = dma.hbm_to_vmem [thread:$0]  %s1556_s1, 1024, %s20_s21, [#allocation3], %s1113_s23, %s1113_s23, %s1114_s24  }
  0x16   :  { %s1115_s30 = smov [#allocation6]  }
  0x17   :  { %s43_s6 = sshll.u32 %s1115_s30, 4  ;;  %s44_s6 = int_to_ptr.vmem [resolvable:$true] %s43_s6 }
  0x18   :  { %s1095_s7 = scalar_lea.vmem %s44_s6, 4096  ;;  %p1100_p11 = scmp.lt.s32.totalorder %s44_s6, %s44_s6 }
  0x19   :  { %p1096_p10 = scmp.ne.s32.totalorder %s44_s6, %s1095_s7  ;;  %p1101_p12 = scmp.lt.s32.totalorder %s1095_s7, %s1095_s7 }
  0x1b   :  { %p1102_p13 = por %p1101_p12, %p1100_p11 }
  0x1d   :  { %p1103_p0 = pnand %p1102_p13, %p1096_p10 }
  0x1f   :  { %1106 = shalt.err (!%p1103_p0)
}
  0x20   :  { %s1116_s2 = smov 128   ;;  %s1117_s8 = smov 8  }
  0x21   :  { %49 = dma.hbm_to_vmem [thread:$0]  %s1558_s3, 4096, %s44_s6, [#allocation5], %s1116_s2, %s1116_s2, %s1117_s8  }
  0x22   :  { %1107 = dma.done.wait [#allocation3], 1024  }
  0x23   :  { %1108 = vsyncadd [#allocation3], 4294966272 }
  0x24   :  { %1109 = dma.done.wait [#allocation5], 8192  }
  0x25   :  { %1110 = vsyncadd [#allocation5], 4294959104  ;;  %v1564_v0 = vmov 0.0   ;;  %v86_v1 = vld [vmem:[#allocation2 + $0x38] sm:$0xff]  ;;  %v61_v2 = vld [vmem:[%s1555_s0] sm:$0xff]  ;;  %s1119_s12 = smov 120  }
  0x26   :  { %170 = vmatprep.mubr.f32.mxu0 %v1564_v0  ;;  %420 = vmatprep.mubr.f32.mxu1 %v1564_v0  ;;  %v85_v3 = vld [vmem:[#allocation2 + $0x30] sm:$0xff]  ;;  %v84_v4 = vld [vmem:[#allocation2 + $0x28] sm:$0xff]  ;;  %v83_v5 = vld [vmem:[#allocation2 + $0x20] sm:$0xff]  ;;  %s1120_s3 = smov 104   ;;  %s1121_s13 = smov 112   ;;  %vm87_vm0 = vcmask 261120  }
  0x27   :  { %130 = vmatprep.subr.mxu0 %v86_v1  ;;  %63 = vrot.lane.b32.xlu0 %v61_v2, %s1119_s12  ;;  %v82_v6 = vld [vmem:[#allocation2 + $0x18] sm:$0xff]  ;;  %v81_v7 = vld [vmem:[#allocation2 + $0x10] sm:$0xff]  ;;  %v80_v8 = vld [vmem:[#allocation2 + $0x8] sm:$0xff]  ;;  %s1122_s0 = smov 96   ;;  %s1123_s14 = smov 88  }
  0x28   :  { %131 = vmatpush1.msra.mxu0 %v85_v3  ;;  %67 = vrot.lane.b32.xlu1 %v61_v2, %s1120_s3  ;;  %v79_v9 = vld [vmem:[#allocation2] sm:$0xff]  ;;  %s1124_s15 = smov 80   ;;  %s1125_s16 = smov 72   ;;  %v355_v10 = vld [vmem:[#allocation4 + $0xf8] sm:$0xff]  ;;  %v354_v11 = vld [vmem:[#allocation4 + $0xf0] sm:$0xff] }
  0x29   :  { %132 = vmatprep.subr.mxu0 %v84_v4  ;;  %s1126_s17 = smov 64   ;;  %v353_v12 = vld [vmem:[#allocation4 + $0xe8] sm:$0xff]  ;;  %356 = vmatprep.subr.mxu1 %v355_v10  ;;  %v352_v13 = vld [vmem:[#allocation4 + $0xe0] sm:$0xff]  ;;  %v351_v14 = vld [vmem:[#allocation4 + $0xd8] sm:$0xff]  ;;  %s1127_s18 = smov 24  }
  0x2a   :  { %133 = vmatpush1.msra.mxu0 %v83_v5  ;;  %357 = vmatpush1.msra.mxu1 %v354_v11  ;;  %v350_v15 = vld [vmem:[#allocation4 + $0xd0] sm:$0xff]  ;;  %v349_v16 = vld [vmem:[#allocation4 + $0xc8] sm:$0xff]  ;;  %v348_v17 = vld [vmem:[#allocation4 + $0xc0] sm:$0xff]  ;;  %s1128_s19 = smov 32   ;;  %s1129_s20 = smov 40  }
  0x2b   :  { %134 = vmatprep.subr.mxu0 %v82_v6  ;;  %65 = vrot.lane.b32.xlu0 %v61_v2, %s1121_s13  ;;  %v347_v18 = vld [vmem:[#allocation4 + $0xb8] sm:$0xff]  ;;  %v346_v19 = vld [vmem:[#allocation4 + $0xb0] sm:$0xff]  ;;  %v345_v20 = vld [vmem:[#allocation4 + $0xa8] sm:$0xff]  ;;  %s1130_s21 = smov 48   ;;  %s1131_s22 = smov 56  }
  0x2c   :  { %135 = vmatpush1.msra.mxu0 %v81_v7  ;;  %69 = vrot.lane.b32.xlu1 %v61_v2, %s1122_s0  ;;  %v344_v21 = vld [vmem:[#allocation4 + $0xa0] sm:$0xff]  ;;  %v343_v22 = vld [vmem:[#allocation4 + $0x98] sm:$0xff]  ;;  %v342_v23 = vld [vmem:[#allocation4 + $0x90] sm:$0xff] }
  0x2d   :  { %136 = vmatprep.subr.mxu0 %v80_v8  ;;  %358 = vmatprep.subr.mxu1 %v353_v12  ;;  %v341_v24 = vld [vmem:[#allocation4 + $0x88] sm:$0xff]  ;;  %v340_v25 = vld [vmem:[#allocation4 + $0x80] sm:$0xff]  ;;  %v339_v26 = vld [vmem:[#allocation4 + $0x78] sm:$0xff] }
  0x2e   :  { %137 = vmatpush1.msra.mxu0 %v79_v9  ;;  %359 = vmatpush1.msra.mxu1 %v352_v13  ;;  %v338_v27 = vld [vmem:[#allocation4 + $0x70] sm:$0xff]  ;;  %v337_v28 = vld [vmem:[#allocation4 + $0x68] sm:$0xff]  ;;  %v336_v29 = vld [vmem:[#allocation4 + $0x60] sm:$0xff] }
  0x2f   :  { %848 = vmatmul.mubr.msk.f32.vlgmr.msra.gmra.mxu0 %vm87_vm0, %v61_v2  ;;  %71 = vrot.lane.b32.xlu0 %v61_v2, %s1123_s14  ;;  %v335_v30 = vld [vmem:[#allocation4 + $0x58] sm:$0xff]  ;;  %v334_v31 = vld [vmem:[#allocation4 + $0x50] sm:$0xff]  ;;  %v333_v32 = vld [vmem:[#allocation4 + $0x48] sm:$0xff] }
  0x30   :  { %73 = vrot.lane.b32.xlu1 %v61_v2, %s1124_s15  ;;  %176 = vmatprep.mubr.f32.mxu0 %v1564_v0  ;;  %v332_v33 = vld [vmem:[#allocation4 + $0x40] sm:$0xff]  ;;  %v331_v34 = vld [vmem:[#allocation4 + $0x38] sm:$0xff]  ;;  %v330_v35 = vld [vmem:[#allocation4 + $0x30] sm:$0xff] }
  0x31   :  { %360 = vmatprep.subr.mxu1 %v351_v14  ;;  %v329_v36 = vld [vmem:[#allocation4 + $0x28] sm:$0xff]  ;;  %v328_v37 = vld [vmem:[#allocation4 + $0x20] sm:$0xff]  ;;  %v327_v38 = vld [vmem:[#allocation4 + $0x18] sm:$0xff] }
  0x32   :  { %361 = vmatpush1.msra.mxu1 %v350_v15  ;;  %v326_v39 = vld [vmem:[#allocation4 + $0x10] sm:$0xff]  ;;  %v325_v40 = vld [vmem:[#allocation4 + $0x8] sm:$0xff]  ;;  %v324_v41 = vld [vmem:[#allocation4] sm:$0xff] }
  0x33   :  { %75 = vrot.lane.b32.xlu0 %v61_v2, %s1125_s16  ;;  %362 = vmatprep.subr.mxu1 %v349_v16  ;;  %v1202_v62 = vld [vmem:[#allocation6 + $0xf8] sm:$0xff]  ;;  %v1206_v1 = vld [vmem:[#allocation6 + $0xf0] sm:$0xff]  ;;  %v1213_v3 = vld [vmem:[#allocation6 + $0xe8] sm:$0xff] }
  0x34   :  { %77 = vrot.lane.b32.xlu1 %v61_v2, %s1126_s17  ;;  %363 = vmatpush1.msra.mxu1 %v348_v17  ;;  %v1204_v63 = vld [vmem:[#allocation6 + $0x78] sm:$0xff]  ;;  %v1209_v2 = vld [vmem:[#allocation6 + $0x70] sm:$0xff]  ;;  %v1217_v4 = vld [vmem:[#allocation6 + $0x68] sm:$0xff] }
  0x35   :  { %364 = vmatprep.subr.mxu1 %v347_v18  ;;  %858 = vmatprep.subr.mxu0 %v1202_v62  ;;  %v1221_v5 = vld [vmem:[#allocation6 + $0xe0] sm:$0xff]  ;;  %v1229_v7 = vld [vmem:[#allocation6 + $0xd8] sm:$0xff]  ;;  %v1237_v9 = vld [vmem:[#allocation6 + $0xd0] sm:$0xff] }
  0x36   :  { %365 = vmatpush1.msra.mxu1 %v346_v19  ;;  %859 = vmatpush3.msra.mxu0 %v1204_v63  ;;  %v1225_v6 = vld [vmem:[#allocation6 + $0x60] sm:$0xff]  ;;  %v1233_v8 = vld [vmem:[#allocation6 + $0x58] sm:$0xff]  ;;  %v1241_v10 = vld [vmem:[#allocation6 + $0x50] sm:$0xff] }
  0x37   :  { %366 = vmatprep.subr.mxu1 %v345_v20  ;;  %860 = vmatprep.subr.mxu0 %v1206_v1  ;;  %v1245_v11 = vld [vmem:[#allocation6 + $0xc8] sm:$0xff]  ;;  %v1253_v13 = vld [vmem:[#allocation6 + $0xc0] sm:$0xff]  ;;  %v1261_v15 = vld [vmem:[#allocation6 + $0xb8] sm:$0xff] }
  0x38   :  { %367 = vmatpush1.msra.mxu1 %v344_v21  ;;  %861 = vmatpush3.msra.mxu0 %v1209_v2  ;;  %v1249_v12 = vld [vmem:[#allocation6 + $0x48] sm:$0xff]  ;;  %v1257_v14 = vld [vmem:[#allocation6 + $0x40] sm:$0xff]  ;;  %v1265_v16 = vld [vmem:[#allocation6 + $0x38] sm:$0xff] }
  0x39   :  { %368 = vmatprep.subr.mxu1 %v343_v22  ;;  %862 = vmatprep.subr.mxu0 %v1213_v3  ;;  %v1269_v17 = vld [vmem:[#allocation6 + $0xb0] sm:$0xff]  ;;  %v1277_v19 = vld [vmem:[#allocation6 + $0xa8] sm:$0xff]  ;;  %v1285_v21 = vld [vmem:[#allocation6 + $0xa0] sm:$0xff] }
  0x3a   :  { %369 = vmatpush1.msra.mxu1 %v342_v23  ;;  %863 = vmatpush3.msra.mxu0 %v1217_v4  ;;  %v1273_v18 = vld [vmem:[#allocation6 + $0x30] sm:$0xff]  ;;  %v1281_v20 = vld [vmem:[#allocation6 + $0x28] sm:$0xff]  ;;  %v1289_v22 = vld [vmem:[#allocation6 + $0x20] sm:$0xff] }
  0x3b   :  { %370 = vmatprep.subr.mxu1 %v341_v24  ;;  %864 = vmatprep.subr.mxu0 %v1221_v5  ;;  %v1293_v23 = vld [vmem:[#allocation6 + $0x98] sm:$0xff] }
  0x3c   :  { %371 = vmatpush1.msra.mxu1 %v340_v25  ;;  %865 = vmatpush3.msra.mxu0 %v1225_v6  ;;  %v1297_v24 = vld [vmem:[#allocation6 + $0x18] sm:$0xff]  ;;  %v1306_v25 = vld [vmem:[#allocation6 + $0x90] sm:$0xff] }
  0x3d   :  { %372 = vmatprep.subr.mxu1 %v339_v26  ;;  %866 = vmatprep.subr.mxu0 %v1229_v7  ;;  %v1309_v26 = vld [vmem:[#allocation6 + $0x10] sm:$0xff] }
  0x3e   :  { %373 = vmatpush1.msra.mxu1 %v338_v27  ;;  %867 = vmatpush3.msra.mxu0 %v1233_v8  ;;  %v1313_v27 = vld [vmem:[#allocation6 + $0x88] sm:$0xff] }
  0x3f   :  { %374 = vmatprep.subr.mxu1 %v337_v28  ;;  %868 = vmatprep.subr.mxu0 %v1237_v9  ;;  %v1317_v28 = vld [vmem:[#allocation6 + $0x8] sm:$0xff] }
  0x40   :  { %375 = vmatpush1.msra.mxu1 %v336_v29  ;;  %869 = vmatpush3.msra.mxu0 %v1241_v10  ;;  %1568 = vst [vmem:[#allocation9_spill] sm:$0xff] %v1317_v28  ;;  %v1321_v29 = vld [vmem:[#allocation6 + $0x80] sm:$0xff] }
  0x41   :  { %376 = vmatprep.subr.mxu1 %v335_v30  ;;  %870 = vmatprep.subr.mxu0 %v1245_v11  ;;  %1569 = vst [vmem:[#allocation10_spill] sm:$0xff] %v1321_v29  ;;  %v1325_v30 = vld [vmem:[#allocation6] sm:$0xff] }
  0x42   :  { %377 = vmatpush1.msra.mxu1 %v334_v31  ;;  %871 = vmatpush3.msra.mxu0 %v1249_v12  ;;  %1570 = vst [vmem:[#allocation11_spill] sm:$0xff] %v1325_v30 }
  0x43   :  { %378 = vmatprep.subr.mxu1 %v333_v32  ;;  %872 = vmatprep.subr.mxu0 %v1253_v13 }
  0x44   :  { %379 = vmatpush1.msra.mxu1 %v332_v33  ;;  %873 = vmatpush3.msra.mxu0 %v1257_v14 }
  0x45   :  { %380 = vmatprep.subr.mxu1 %v331_v34  ;;  %874 = vmatprep.subr.mxu0 %v1261_v15 }
  0x46   :  { %381 = vmatpush1.msra.mxu1 %v330_v35  ;;  %875 = vmatpush3.msra.mxu0 %v1265_v16 }
  0x47   :  { %382 = vmatprep.subr.mxu1 %v329_v36  ;;  %876 = vmatprep.subr.mxu0 %v1269_v17 }
  0x48   :  { %383 = vmatpush1.msra.mxu1 %v328_v37  ;;  %877 = vmatpush3.msra.mxu0 %v1273_v18 }
  0x49   :  { %384 = vmatprep.subr.mxu1 %v327_v38  ;;  %878 = vmatprep.subr.mxu0 %v1277_v19 }
  0x4a   :  { %385 = vmatpush1.msra.mxu1 %v326_v39  ;;  %879 = vmatpush3.msra.mxu0 %v1281_v20 }
  0x4b   :  { %386 = vmatprep.subr.mxu1 %v325_v40  ;;  %880 = vmatprep.subr.mxu0 %v1285_v21 }
  0x4c   :  { %387 = vmatpush1.msra.mxu1 %v324_v41  ;;  %881 = vmatpush3.msra.mxu0 %v1289_v22 }
  0x4d   :  { %976 = vmatprep.subr.mxu1 %v1202_v62  ;;  %882 = vmatprep.subr.mxu0 %v1293_v23 }
  0x4e   :  { %883 = vmatpush3.msra.mxu0 %v1297_v24 }
  0x4f   :  { %884 = vmatprep.subr.mxu0 %v1306_v25 }
  0x50   :  { %885 = vmatpush3.msra.mxu0 %v1309_v26 }
  0x51   :  { %886 = vmatprep.subr.mxu0 %v1313_v27 }
  0x52   :  { %887 = vmatpush3.msra.mxu0 %v1317_v28 }
  0x53   :  { %888 = vmatprep.subr.mxu0 %v1321_v29 }
  0x54   :  { %889 = vmatpush3.msra.mxu0 %v1325_v30 }
  0x55   :  { %917 = vmatprep.subr.mxu0 %v1202_v62 }
  0x99   :  { %v64_v42 = vpop.permute.xlu0 %63 }
  0x9a   :  { %849 = vmatmul.mubr.msk.f32.gmra.mxu0 %vm87_vm0, %v64_v42  ;;  %v68_v44 = vpop.permute.xlu1 %67 }
  0x9b   :  { %182 = vmatprep.mubr.f32.mxu0 %v1564_v0 }
  0x9d   :  { %v66_v43 = vpop.permute.xlu0 %65 }
  0x9e   :  { %850 = vmatmul.mubr.msk.f32.gmra.mxu0 %vm87_vm0, %v66_v43  ;;  %v70_v45 = vpop.permute.xlu1 %69 }
  0x9f   :  { %188 = vmatprep.mubr.f32.mxu0 %v1564_v0 }
  0xa1   :  { %v72_v46 = vpop.permute.xlu0 %71 }
  0xa2   :  { %851 = vmatmul.mubr.msk.f32.gmra.mxu0 %vm87_vm0, %v68_v44  ;;  %v74_v47 = vpop.permute.xlu1 %73 }
  0xa3   :  { %194 = vmatprep.mubr.f32.mxu0 %v1564_v0 }
  0xa5   :  { %v76_v48 = vpop.permute.xlu0 %75 }
  0xa6   :  { %852 = vmatmul.mubr.msk.f32.gmra.mxu0 %vm87_vm0, %v70_v45  ;;  %v78_v49 = vpop.permute.xlu1 %77 }
  0xa7   :  { %200 = vmatprep.mubr.f32.mxu0 %v1564_v0 }
  0xaa   :  { %853 = vmatmul.mubr.msk.f32.gmra.mxu0 %vm87_vm0, %v72_v46 }
  0xab   :  { %206 = vmatprep.mubr.f32.mxu0 %v1564_v0 }
  0xae   :  { %854 = vmatmul.mubr.msk.f32.gmra.mxu0 %vm87_vm0, %v74_v47 }
  0xaf   :  { %212 = vmatprep.mubr.f32.mxu0 %v1564_v0 }
  0xb2   :  { %855 = vmatmul.mubr.msk.f32.gmra.mxu0 %vm87_vm0, %v76_v48 }
  0xb3   :  { %218 = vmatprep.mubr.f32.mxu0 %v1564_v0 }
  0xb6   :  { %856 = vmatmul.mubr.msk.f32.gmra.mxu0 %vm87_vm0, %v78_v49 }
  0xef   :  { %v172_v50 = vpop.f32.mrf.mxu0 }
  0xf0   :  { %v225_v51 = vmul.f32 %v172_v50, %v172_v50 }
  0xf1   :  { %v174_v52 = vpop.f32.mrf.mxu0 }
  0xf2   :  { %v234_v53 = vmul.f32 %v174_v52, %v174_v52 }
  0xf4   :  { %v243_v54 = vadd.f32 %v234_v53, %v225_v51 }
  0xf6   :  { %vm252_vm1 = vcmp.gt.f32.partialorder %v243_v54, 0.0 }
  0xf7   :  { %v261_v55 = vsel %vm252_vm1, %v243_v54, 1.0 }
  0xf8   :  { %1029 = vrsqrt.f32 %v261_v55 }
 0x105   :  { %v1030_v56 = vpop.eup %1029 }
 0x106   :  { %v297_v57 = vmul.f32 %v1030_v56, %v174_v52  ;;  %v315_v58 = vmul.f32 %v1030_v56, %v243_v54  ;;  %v279_v59 = vmul.f32 %v1030_v56, %v172_v50 }
 0x108   :  { %421 = vmatmul.mubr.f32.vlgmr.msra.gmra.mxu1 %v315_v58  ;;  %v1197_v60 = vsel %vm252_vm1, %v279_v59, 1.0  ;;  %v1199_v61 = vsel %vm252_vm1, %v297_v57, 0.0 }
 0x109   :  { %426 = vmatprep.mubr.f32.mxu1 %v1564_v0  ;;  %992 = vmatpush3.msra.mxu1 %v1204_v63 }
 0x10a   :  { %977 = vmatprep.subr.mxu1 %v1206_v1 }
 0x10b   :  { %993 = vmatpush3.msra.mxu1 %v1209_v2 }
 0x10c   :  { %978 = vmatprep.subr.mxu1 %v1213_v3 }
 0x10d   :  { %994 = vmatpush3.msra.mxu1 %v1217_v4 }
 0x10e   :  { %979 = vmatprep.subr.mxu1 %v1221_v5 }
 0x10f   :  { %995 = vmatpush3.msra.mxu1 %v1225_v6 }
 0x110   :  { %980 = vmatprep.subr.mxu1 %v1229_v7 }
 0x111   :  { %996 = vmatpush3.msra.mxu1 %v1233_v8 }
 0x112   :  { %981 = vmatprep.subr.mxu1 %v1237_v9 }
 0x113   :  { %997 = vmatpush3.msra.mxu1 %v1241_v10 }
 0x114   :  { %982 = vmatprep.subr.mxu1 %v1245_v11 }
 0x115   :  { %998 = vmatpush3.msra.mxu1 %v1249_v12 }
 0x116   :  { %983 = vmatprep.subr.mxu1 %v1253_v13 }
 0x117   :  { %999 = vmatpush3.msra.mxu1 %v1257_v14 }
 0x118   :  { %984 = vmatprep.subr.mxu1 %v1261_v15 }
 0x119   :  { %1000 = vmatpush3.msra.mxu1 %v1265_v16 }
 0x11a   :  { %985 = vmatprep.subr.mxu1 %v1269_v17 }
 0x11b   :  { %1001 = vmatpush3.msra.mxu1 %v1273_v18 }
 0x11c   :  { %986 = vmatprep.subr.mxu1 %v1277_v19 }
 0x11d   :  { %1002 = vmatpush3.msra.mxu1 %v1281_v20 }
 0x11e   :  { %987 = vmatprep.subr.mxu1 %v1285_v21 }
 0x11f   :  { %1003 = vmatpush3.msra.mxu1 %v1289_v22 }
 0x120   :  { %988 = vmatprep.subr.mxu1 %v1293_v23 }
 0x121   :  { %1004 = vmatpush3.msra.mxu1 %v1297_v24 }
 0x122   :  { %989 = vmatprep.subr.mxu1 %v1306_v25 }
 0x123   :  { %1005 = vmatpush3.msra.mxu1 %v1309_v26 }
 0x124   :  { %990 = vmatprep.subr.mxu1 %v1313_v27 }
 0x125   :  { %1006 = vmatpush3.msra.mxu1 %v1317_v28 }
 0x126   :  { %991 = vmatprep.subr.mxu1 %v1321_v29 }
 0x127   :  { %1007 = vmatpush3.msra.mxu1 %v1325_v30 }
 0x15a   :  { %v178_v31 = vpop.f32.mrf.mxu0 }
 0x15b   :  { %v226_v33 = vmul.f32 %v178_v31, %v178_v31 }
 0x15c   :  { %v180_v32 = vpop.f32.mrf.mxu0 }
 0x15d   :  { %v235_v34 = vmul.f32 %v180_v32, %v180_v32 }
 0x15e   :  { %v184_v35 = vpop.f32.mrf.mxu0 }
 0x15f   :  { %v244_v36 = vadd.f32 %v235_v34, %v226_v33  ;;  %v227_v38 = vmul.f32 %v184_v35, %v184_v35 }
 0x160   :  { %v186_v37 = vpop.f32.mrf.mxu0 }
 0x161   :  { %vm253_vm2 = vcmp.gt.f32.partialorder %v244_v36, 0.0  ;;  %v236_v39 = vmul.f32 %v186_v37, %v186_v37 }
 0x162   :  { %v262_v40 = vsel %vm253_vm2, %v244_v36, 1.0  ;;  %v1332_v41 = vpop.f32.mrf.mxu0 }
 0x163   :  { %1031 = vrsqrt.f32 %v262_v40  ;;  %v245_v42 = vadd.f32 %v236_v39, %v227_v38  ;;  %v228_v44 = vmul.f32 %v1332_v41, %v1332_v41 }
 0x164   :  { %v192_v43 = vpop.f32.mrf.mxu0 }
 0x165   :  { %vm254_vm3 = vcmp.gt.f32.partialorder %v245_v42, 0.0  ;;  %v237_v45 = vmul.f32 %v192_v43, %v192_v43 }
 0x166   :  { %v263_v46 = vsel %vm254_vm3, %v245_v42, 1.0  ;;  %v1337_v47 = vpop.f32.mrf.mxu0 }
 0x167   :  { %1033 = vrsqrt.f32 %v263_v46  ;;  %v1339_v48 = vadd.f32 %v237_v45, %v228_v44  ;;  %v229_v50 = vmul.f32 %v1337_v47, %v1337_v47 }
 0x168   :  { %v1341_v49 = vpop.f32.mrf.mxu0 }
 0x169   :  { %vm255_vm4 = vcmp.gt.f32.partialorder %v1339_v48, 0.0  ;;  %v238_v51 = vmul.f32 %v1341_v49, %v1341_v49 }
 0x16a   :  { %v264_v52 = vsel %vm255_vm4, %v1339_v48, 1.0  ;;  %v1351_v53 = vpop.f32.mrf.mxu0 }
 0x16b   :  { %1035 = vrsqrt.f32 %v264_v52  ;;  %v1353_v54 = vadd.f32 %v238_v51, %v229_v50  ;;  %v230_v56 = vmul.f32 %v1351_v53, %v1351_v53 }
 0x16c   :  { %v1355_v55 = vpop.f32.mrf.mxu0 }
 0x16d   :  { %vm256_vm5 = vcmp.gt.f32.partialorder %v1353_v54, 0.0  ;;  %v239_v57 = vmul.f32 %v1355_v55, %v1355_v55 }
 0x16e   :  { %v265_v58 = vsel %vm256_vm5, %v1353_v54, 1.0  ;;  %v1365_v59 = vpop.f32.mrf.mxu0 }
 0x16f   :  { %1037 = vrsqrt.f32 %v265_v58  ;;  %v1367_v62 = vadd.f32 %v239_v57, %v230_v56  ;;  %v231_v34 = vmul.f32 %v1365_v59, %v1365_v59 }
 0x170   :  { %v1032_v33 = vpop.eup %1031  ;;  %v1371_v38 = vpop.f32.mrf.mxu0 }
 0x171   :  { %v298_v39 = vmul.f32 %v1032_v33, %v180_v32  ;;  %vm257_vm6 = vcmp.gt.f32.partialorder %v1367_v62, 0.0  ;;  %v240_v40 = vmul.f32 %v1371_v38, %v1371_v38  ;;  %v316_v44 = vmul.f32 %v1032_v33, %v244_v36 }
 0x172   :  { %v266_v45 = vsel %vm257_vm6, %v1367_v62, 1.0  ;;  %v1379_v46 = vpop.f32.mrf.mxu0  ;;  %v280_v50 = vmul.f32 %v1032_v33, %v178_v31  ;;  %v1573_v36 = vmov 0.0  }
 0x173   :  { %1039 = vrsqrt.f32 %v266_v45  ;;  %v249_v51 = vadd.f32 %v240_v40, %v231_v34  ;;  %427 = vmatmul.mubr.f32.gmra.mxu1 %v316_v44  ;;  %v1382_v52 = vsel %vm253_vm2, %v298_v39, 0.0  ;;  %v232_v56 = vmul.f32 %v1379_v46, %v1379_v46 }
 0x174   :  { %1571 = vst [vmem:[#allocation12_spill] sm:$0xff] %v1382_v52  ;;  %v1034_v32 = vpop.eup %1033  ;;  %v216_v57 = vpop.f32.mrf.mxu0  ;;  %432 = vmatprep.mubr.f32.mxu1 %v1564_v0  ;;  %v1388_v58 = vsel %vm253_vm2, %v280_v50, 1.0 }
 0x175   :  { %1572 = vst [vmem:[#allocation13_spill] sm:$0xff] %v1388_v58  ;;  %v299_v30 = vmul.f32 %v1034_v32, %v186_v37  ;;  %vm258_vm7 = vcmp.gt.f32.partialorder %v249_v51, 0.0  ;;  %v241_v29 = vmul.f32 %v216_v57, %v216_v57  ;;  %v317_v31 = vmul.f32 %v1034_v32, %v245_v42 }
 0x176   :  { %v267_v33 = vsel %vm258_vm7, %v249_v51, 1.0  ;;  %v220_v34 = vpop.f32.mrf.mxu0  ;;  %v281_v40 = vmul.f32 %v1034_v32, %v184_v35 }
 0x177   :  { %1041 = vrsqrt.f32 %v267_v33  ;;  %v250_v39 = vadd.f32 %v241_v29, %v232_v56  ;;  %433 = vmatmul.mubr.f32.gmra.mxu1 %v317_v31  ;;  %v1392_v44 = vsel %vm254_vm3, %v299_v30, 0.0  ;;  %v233_v52 = vmul.f32 %v220_v34, %v220_v34 }
 0x178   :  { %v1036_v45 = vpop.eup %1035  ;;  %v222_v0 = vpop.f32.mrf.mxu0  ;;  %438 = vmatprep.mubr.f32.mxu1 %v1573_v36  ;;  %v1396_v37 = vsel %vm254_vm3, %v281_v40, 1.0 }
 0x179   :  { %v300_v50 = vmul.f32 %v1036_v45, %v192_v43  ;;  %vm259_vm8 = vcmp.gt.f32.partialorder %v250_v39, 0.0  ;;  %v242_v58 = vmul.f32 %v222_v0, %v222_v0  ;;  %v318_v28 = vmul.f32 %v1036_v45, %v1339_v48 }
 0x17a   :  { %v268_v35 = vsel %vm259_vm8, %v250_v39, 1.0  ;;  %v282_v29 = vmul.f32 %v1036_v45, %v1332_v41 }
 0x17b   :  { %1043 = vrsqrt.f32 %v268_v35  ;;  %v251_v30 = vadd.f32 %v242_v58, %v233_v52  ;;  %439 = vmatmul.mubr.f32.gmra.mxu1 %v318_v28  ;;  %v1403_v32 = vsel %vm255_vm4, %v300_v50, 0.0 }
 0x17c   :  { %v1038_v56 = vpop.eup %1037  ;;  %444 = vmatprep.mubr.f32.mxu1 %v1573_v36  ;;  %v1408_v42 = vsel %vm255_vm4, %v282_v29, 1.0 }
 0x17d   :  { %v301_v43 = vmul.f32 %v1038_v56, %v1341_v49  ;;  %vm260_vm9 = vcmp.gt.f32.partialorder %v251_v30, 0.0  ;;  %v319_v31 = vmul.f32 %v1038_v56, %v1353_v54  ;;  %v283_v41 = vmul.f32 %v1038_v56, %v1337_v47 }
 0x17e   :  { %v269_v28 = vsel %vm260_vm9, %v251_v30, 1.0 }
 0x17f   :  { %1045 = vrsqrt.f32 %v269_v28  ;;  %445 = vmatmul.mubr.f32.gmra.mxu1 %v319_v31  ;;  %v1416_v52 = vsel %vm256_vm5, %v283_v41, 1.0  ;;  %v1420_v48 = vsel %vm256_vm5, %v301_v43, 0.0 }
 0x180   :  { %v1040_v58 = vpop.eup %1039  ;;  %450 = vmatprep.mubr.f32.mxu1 %v1573_v36 }
 0x181   :  { %v302_v49 = vmul.f32 %v1040_v58, %v1355_v55  ;;  %v320_v33 = vmul.f32 %v1040_v58, %v1367_v62  ;;  %v284_v47 = vmul.f32 %v1040_v58, %v1351_v53 }
 0x183   :  { %451 = vmatmul.mubr.f32.gmra.mxu1 %v320_v33  ;;  %v1428_v40 = vsel %vm257_vm6, %v284_v47, 1.0  ;;  %v1432_v45 = vsel %vm257_vm6, %v302_v49, 0.0 }
 0x184   :  { %v1042_v54 = vpop.eup %1041  ;;  %456 = vmatprep.mubr.f32.mxu1 %v1573_v36 }
 0x185   :  { %v303_v50 = vmul.f32 %v1042_v54, %v1371_v38  ;;  %v321_v35 = vmul.f32 %v1042_v54, %v249_v51  ;;  %v285_v55 = vmul.f32 %v1042_v54, %v1365_v59 }
 0x187   :  { %457 = vmatmul.mubr.f32.gmra.mxu1 %v321_v35  ;;  %v1438_v53 = vsel %vm258_vm7, %v285_v55, 1.0  ;;  %v1441_v29 = vsel %vm258_vm7, %v303_v50, 0.0 }
 0x188   :  { %v1044_v56 = vpop.eup %1043  ;;  %462 = vmatprep.mubr.f32.mxu1 %v1573_v36 }
 0x189   :  { %v304_v62 = vmul.f32 %v1044_v56, %v216_v57  ;;  %v322_v43 = vmul.f32 %v1044_v56, %v250_v39  ;;  %v286_v31 = vmul.f32 %v1044_v56, %v1379_v46 }
 0x18b   :  { %463 = vmatmul.mubr.f32.gmra.mxu1 %v322_v43  ;;  %v1446_v38 = vsel %vm259_vm8, %v286_v31, 1.0  ;;  %v1449_v59 = vsel %vm259_vm8, %v304_v62, 0.0 }
 0x18c   :  { %v1046_v41 = vpop.eup %1045  ;;  %468 = vmatprep.mubr.f32.mxu1 %v1573_v36 }
 0x18d   :  { %v305_v51 = vmul.f32 %v1046_v41, %v222_v0  ;;  %v323_v28 = vmul.f32 %v1046_v41, %v251_v30  ;;  %v287_v58 = vmul.f32 %v1046_v41, %v220_v34  ;;  %v1574_v0 = vld [vmem:[#allocation9_spill] sm:$0xff] }
 0x18f   :  { %469 = vmatmul.mubr.f32.gmra.mxu1 %v323_v28  ;;  %v1453_v49 = vsel %vm260_vm9, %v287_v58, 1.0  ;;  %v1456_v57 = vsel %vm260_vm9, %v305_v51, 0.0 }
 0x1c8   :  { %v422_v46 = vpop.f32.mrf.mxu1 }
 0x1c9   :  { %v475_v33 = vmax.f32 %v422_v46, 0.0 }
 0x1cb   :  { %v493_v47 = vmul.f32 %v475_v33, %v1197_v60  ;;  %v502_v39 = vmul.f32 %v475_v33, %v1199_v61 }
 0x1cd   :  { %607 = vmatprep.mubr.f32.mxu0 %v502_v39 }
 0x1ce   :  { %608 = vmatmul.mubr.f32.vlgmr.msra.gmra.mxu0 %v493_v47 }
 0x1cf   :  { %918 = vmatpush3.msra.mxu0 %v1204_v63  ;;  %v1575_v63 = vld [vmem:[#allocation10_spill] sm:$0xff] }
 0x1d0   :  { %919 = vmatprep.subr.mxu0 %v1206_v1  ;;  %v1576_v1 = vld [vmem:[#allocation11_spill] sm:$0xff] }
 0x1d1   :  { %920 = vmatpush3.msra.mxu0 %v1209_v2  ;;  %v1491_v2 = vpop.f32.mrf.mxu1 }
 0x1d2   :  { %921 = vmatprep.subr.mxu0 %v1213_v3 }
 0x1d3   :  { %922 = vmatpush3.msra.mxu0 %v1217_v4 }
 0x1d4   :  { %923 = vmatprep.subr.mxu0 %v1221_v5 }
 0x1d5   :  { %924 = vmatpush3.msra.mxu0 %v1225_v6  ;;  %v1577_v6 = vld [vmem:[#allocation13_spill] sm:$0xff] }
 0x1d6   :  { %925 = vmatprep.subr.mxu0 %v1229_v7 }
 0x1d7   :  { %926 = vmatpush3.msra.mxu0 %v1233_v8  ;;  %v1578_v8 = vld [vmem:[#allocation12_spill] sm:$0xff] }
 0x1d8   :  { %927 = vmatprep.subr.mxu0 %v1237_v9 }
 0x1d9   :  { %928 = vmatpush3.msra.mxu0 %v1241_v10 }
 0x1da   :  { %929 = vmatprep.subr.mxu0 %v1245_v11 }
 0x1db   :  { %930 = vmatpush3.msra.mxu0 %v1249_v12 }
 0x1dc   :  { %931 = vmatprep.subr.mxu0 %v1253_v13 }
 0x1dd   :  { %932 = vmatpush3.msra.mxu0 %v1257_v14 }
 0x1de   :  { %933 = vmatprep.subr.mxu0 %v1261_v15 }
 0x1df   :  { %934 = vmatpush3.msra.mxu0 %v1265_v16 }
 0x1e0   :  { %935 = vmatprep.subr.mxu0 %v1269_v17 }
 0x1e1   :  { %936 = vmatpush3.msra.mxu0 %v1273_v18 }
 0x1e2   :  { %937 = vmatprep.subr.mxu0 %v1277_v19 }
 0x1e3   :  { %938 = vmatpush3.msra.mxu0 %v1281_v20 }
 0x1e4   :  { %939 = vmatprep.subr.mxu0 %v1285_v21 }
 0x1e5   :  { %940 = vmatpush3.msra.mxu0 %v1289_v22 }
 0x1e6   :  { %941 = vmatprep.subr.mxu0 %v1293_v23 }
 0x1e7   :  { %942 = vmatpush3.msra.mxu0 %v1297_v24 }
 0x1e8   :  { %943 = vmatprep.subr.mxu0 %v1306_v25 }
 0x1e9   :  { %944 = vmatpush3.msra.mxu0 %v1309_v26 }
 0x1ea   :  { %945 = vmatprep.subr.mxu0 %v1313_v27 }
 0x1eb   :  { %946 = vmatpush3.msra.mxu0 %v1574_v0 }
 0x1ec   :  { %947 = vmatprep.subr.mxu0 %v1575_v63  ;;  %v476_v63 = vmax.f32 %v1491_v2, 0.0 }
 0x1ed   :  { %948 = vmatpush3.msra.mxu0 %v1576_v1 }
 0x233   :  { %v428_v3 = vpop.f32.mrf.mxu1 }
 0x234   :  { %v477_v4 = vmax.f32 %v428_v3, 0.0 }
 0x235   :  { %v1493_v5 = vpop.f32.mrf.mxu1 }
 0x236   :  { %v494_v7 = vmul.f32 %v477_v4, %v1577_v6  ;;  %v503_v9 = vmul.f32 %v477_v4, %v1578_v8 }
 0x237   :  { %v434_v10 = vpop.f32.mrf.mxu1 }
 0x238   :  { %v479_v11 = vmax.f32 %v434_v10, 0.0  ;;  %612 = vmatprep.mubr.f32.mxu0 %v503_v9  ;;  %v662_v10 = vmul.f32 %v476_v63, %v1199_v61 }
 0x239   :  { %v1497_v12 = vpop.f32.mrf.mxu1  ;;  %613 = vmatmul.mubr.f32.gmra.mxu0 %v494_v7 }
 0x23a   :  { %v495_v13 = vmul.f32 %v479_v11, %v1396_v37  ;;  %v504_v14 = vmul.f32 %v479_v11, %v1392_v44  ;;  %v478_v11 = vmax.f32 %v1493_v5, 0.0 }
 0x23b   :  { %v440_v15 = vpop.f32.mrf.mxu1 }
 0x23c   :  { %v481_v16 = vmax.f32 %v440_v15, 0.0  ;;  %617 = vmatprep.mubr.f32.mxu0 %v504_v14  ;;  %v480_v14 = vmax.f32 %v1497_v12, 0.0  ;;  %v654_v61 = vmul.f32 %v478_v11, %v1577_v6 }
 0x23d   :  { %v442_v17 = vpop.f32.mrf.mxu1  ;;  %618 = vmatmul.mubr.f32.gmra.mxu0 %v495_v13  ;;  %v663_v13 = vmul.f32 %v478_v11, %v1578_v8 }
 0x23e   :  { %v496_v18 = vmul.f32 %v481_v16, %v1408_v42  ;;  %v505_v19 = vmul.f32 %v481_v16, %v1403_v32  ;;  %v482_v20 = vmax.f32 %v442_v17, 0.0  ;;  %v664_v5 = vmul.f32 %v480_v14, %v1392_v44 }
 0x23f   :  { %v446_v21 = vpop.f32.mrf.mxu1 }
 0x240   :  { %v656_v22 = vmul.f32 %v482_v20, %v1408_v42  ;;  %v665_v23 = vmul.f32 %v482_v20, %v1403_v32  ;;  %v483_v24 = vmax.f32 %v446_v21, 0.0  ;;  %622 = vmatprep.mubr.f32.mxu0 %v505_v19 }
 0x241   :  { %v448_v25 = vpop.f32.mrf.mxu1  ;;  %623 = vmatmul.mubr.f32.gmra.mxu0 %v496_v18 }
 0x242   :  { %v497_v26 = vmul.f32 %v483_v24, %v1416_v52  ;;  %v506_v27 = vmul.f32 %v483_v24, %v1420_v48  ;;  %v484_v34 = vmax.f32 %v448_v25, 0.0  ;;  %750 = vmatprep.mubr.f32.mxu1 %v665_v23 }
 0x243   :  { %v452_v36 = vpop.f32.mrf.mxu1  ;;  %751 = vmatmul.mubr.f32.vlgmr.msra.gmra.mxu1 %v656_v22 }
 0x244   :  { %v657_v30 = vmul.f32 %v484_v34, %v1416_v52  ;;  %v666_v54 = vmul.f32 %v484_v34, %v1420_v48  ;;  %v485_v50 = vmax.f32 %v452_v36, 0.0  ;;  %627 = vmatprep.mubr.f32.mxu0 %v506_v27 }
 0x245   :  { %v454_v42 = vpop.f32.mrf.mxu1  ;;  %628 = vmatmul.mubr.f32.gmra.mxu0 %v497_v26 }
 0x246   :  { %v498_v32 = vmul.f32 %v485_v50, %v1428_v40  ;;  %v507_v35 = vmul.f32 %v485_v50, %v1432_v45  ;;  %v486_v55 = vmax.f32 %v454_v42, 0.0  ;;  %755 = vmatprep.mubr.f32.mxu1 %v666_v54 }
 0x247   :  { %v458_v56 = vpop.f32.mrf.mxu1  ;;  %756 = vmatmul.mubr.f32.gmra.mxu1 %v657_v30 }
 0x248   :  { %v658_v62 = vmul.f32 %v486_v55, %v1428_v40  ;;  %v667_v43 = vmul.f32 %v486_v55, %v1432_v45  ;;  %v487_v31 = vmax.f32 %v458_v56, 0.0  ;;  %632 = vmatprep.mubr.f32.mxu0 %v507_v35 }
 0x249   :  { %v460_v52 = vpop.f32.mrf.mxu1  ;;  %633 = vmatmul.mubr.f32.gmra.mxu0 %v498_v32 }
 0x24a   :  { %v499_v48 = vmul.f32 %v487_v31, %v1438_v53  ;;  %v508_v41 = vmul.f32 %v487_v31, %v1441_v29  ;;  %v488_v51 = vmax.f32 %v460_v52, 0.0  ;;  %760 = vmatprep.mubr.f32.mxu1 %v667_v43 }
 0x24b   :  { %v464_v28 = vpop.f32.mrf.mxu1  ;;  %761 = vmatmul.mubr.f32.gmra.mxu1 %v658_v62 }
 0x24c   :  { %v659_v58 = vmul.f32 %v488_v51, %v1438_v53  ;;  %v668_v46 = vmul.f32 %v488_v51, %v1441_v29  ;;  %v489_v33 = vmax.f32 %v464_v28, 0.0  ;;  %637 = vmatprep.mubr.f32.mxu0 %v508_v41 }
 0x24d   :  { %v466_v40 = vpop.f32.mrf.mxu1  ;;  %638 = vmatmul.mubr.f32.gmra.mxu0 %v499_v48 }
 0x24e   :  { %v500_v45 = vmul.f32 %v489_v33, %v1446_v38  ;;  %v509_v47 = vmul.f32 %v489_v33, %v1449_v59  ;;  %v490_v39 = vmax.f32 %v466_v40, 0.0  ;;  %765 = vmatprep.mubr.f32.mxu1 %v668_v46 }
 0x24f   :  { %v470_v0 = vpop.f32.mrf.mxu1  ;;  %766 = vmatmul.mubr.f32.gmra.mxu1 %v659_v58 }
 0x250   :  { %v660_v1 = vmul.f32 %v490_v39, %v1446_v38  ;;  %v669_v53 = vmul.f32 %v490_v39, %v1449_v59  ;;  %v491_v3 = vmax.f32 %v470_v0, 0.0  ;;  %642 = vmatprep.mubr.f32.mxu0 %v509_v47  ;;  %v653_v59 = vmul.f32 %v476_v63, %v1197_v60 }
 0x251   :  { %v472_v29 = vpop.f32.mrf.mxu1  ;;  %643 = vmatmul.mubr.f32.gmra.mxu0 %v500_v45 }
 0x252   :  { %v501_v4 = vmul.f32 %v491_v3, %v1453_v49  ;;  %v510_v7 = vmul.f32 %v491_v3, %v1456_v57  ;;  %v492_v9 = vmax.f32 %v472_v29, 0.0  ;;  %770 = vmatprep.mubr.f32.mxu1 %v669_v53 }
 0x253   :  { %771 = vmatmul.mubr.f32.gmra.mxu1 %v660_v1 }
 0x254   :  { %v661_v2 = vmul.f32 %v492_v9, %v1453_v49  ;;  %v670_v38 = vmul.f32 %v492_v9, %v1456_v57  ;;  %647 = vmatprep.mubr.f32.mxu0 %v510_v7  ;;  %v655_v49 = vmul.f32 %v480_v14, %v1396_v37 }
 0x255   :  { %648 = vmatmul.mubr.f32.gmra.mxu0 %v501_v4 }
 0x256   :  { %735 = vmatprep.mubr.f32.mxu0 %v662_v10  ;;  %775 = vmatprep.mubr.f32.mxu1 %v670_v38 }
 0x257   :  { %776 = vmatmul.mubr.f32.gmra.mxu1 %v661_v2 }
 0x259   :  { %736 = vmatmul.mubr.f32.vlgmr.msra.gmra.mxu0 %v653_v59 }
 0x25a   :  { %740 = vmatprep.mubr.f32.mxu0 %v663_v13 }
 0x25d   :  { %741 = vmatmul.mubr.f32.gmra.mxu0 %v654_v61 }
 0x25e   :  { %745 = vmatprep.mubr.f32.mxu0 %v664_v5 }
 0x261   :  { %746 = vmatmul.mubr.f32.gmra.mxu0 %v655_v49 }
 0x28e   :  { %v1534_v57 = vpop.f32.mrf.mxu0 }
 0x290   :  { %v1536_v15 = vpop.f32.mrf.mxu0 }
 0x291   :  { %v892_v38 = vadd.f32 %v1536_v15, %v1534_v57 }
 0x2f9   :  { %v893_v60 = vpop.f32.mrf.mxu0 }
 0x2fb   :  { %v894_v16 = vpop.f32.mrf.mxu0 }
 0x2fc   :  { %v895_v8 = vadd.f32 %v894_v16, %v893_v60 }
 0x2fd   :  { %v896_v17 = vpop.f32.mrf.mxu0 }
 0x2fe   :  { %783 = vrot.lane.b32.xlu0 %v895_v8, %s1117_s8 }
 0x2ff   :  { %v897_v12 = vpop.f32.mrf.mxu0 }
 0x300   :  { %v898_v18 = vadd.f32 %v897_v12, %v896_v17 }
 0x301   :  { %v899_v6 = vpop.f32.mrf.mxu0 }
 0x302   :  { %789 = vrot.lane.b32.xlu0 %v898_v18, %s1114_s24 }
 0x303   :  { %v900_v44 = vpop.f32.mrf.mxu0  ;;  %v958_v19 = vpop.f32.mrf.mxu1 }
 0x304   :  { %v901_v20 = vadd.f32 %v900_v44, %v899_v6  ;;  %v857_v6 = vld [vmem:[%s1559_s4] ss:$0 sm:$0xff] }
 0x305   :  { %v902_v37 = vpop.f32.mrf.mxu0  ;;  %v959_v21 = vpop.f32.mrf.mxu1 }
 0x306   :  { %v960_v22 = vadd.f32 %v959_v21, %v958_v19  ;;  %795 = vrot.lane.b32.xlu0 %v901_v20, %s1127_s18 }
 0x307   :  { %v903_v23 = vpop.f32.mrf.mxu0  ;;  %v961_v24 = vpop.f32.mrf.mxu1 }
 0x308   :  { %v904_v25 = vadd.f32 %v903_v23, %v902_v37  ;;  %797 = vrot.lane.b32.xlu1 %v960_v22, %s1127_s18 }
 0x309   :  { %v905_v26 = vpop.f32.mrf.mxu0  ;;  %v962_v27 = vpop.f32.mrf.mxu1 }
 0x30a   :  { %v963_v34 = vadd.f32 %v962_v27, %v961_v24  ;;  %801 = vrot.lane.b32.xlu0 %v904_v25, %s1128_s19 }
 0x30b   :  { %v906_v36 = vpop.f32.mrf.mxu0  ;;  %v964_v30 = vpop.f32.mrf.mxu1 }
 0x30c   :  { %v907_v54 = vadd.f32 %v906_v36, %v905_v26  ;;  %803 = vrot.lane.b32.xlu1 %v963_v34, %s1128_s19 }
 0x30d   :  { %v908_v50 = vpop.f32.mrf.mxu0  ;;  %v965_v42 = vpop.f32.mrf.mxu1 }
 0x30e   :  { %v966_v32 = vadd.f32 %v965_v42, %v964_v30  ;;  %807 = vrot.lane.b32.xlu0 %v907_v54, %s1129_s20 }
 0x30f   :  { %v909_v35 = vpop.f32.mrf.mxu0  ;;  %v967_v41 = vpop.f32.mrf.mxu1 }
 0x310   :  { %v910_v55 = vadd.f32 %v909_v35, %v908_v50  ;;  %809 = vrot.lane.b32.xlu1 %v966_v32, %s1129_s20 }
 0x311   :  { %v911_v56 = vpop.f32.mrf.mxu0  ;;  %v968_v46 = vpop.f32.mrf.mxu1 }
 0x312   :  { %813 = vrot.lane.b32.xlu0 %v910_v55, %s1130_s21  ;;  %v969_v53 = vadd.f32 %v968_v46, %v967_v41 }
 0x313   :  { %v912_v62 = vpop.f32.mrf.mxu0  ;;  %v970_v47 = vpop.f32.mrf.mxu1 }
 0x314   :  { %v913_v43 = vadd.f32 %v912_v62, %v911_v56 }
 0x315   :  { %v914_v31 = vpop.f32.mrf.mxu0  ;;  %v971_v1 = vpop.f32.mrf.mxu1 }
 0x316   :  { %819 = vrot.lane.b32.xlu0 %v913_v43, %s1131_s22  ;;  %v972_v29 = vadd.f32 %v971_v1, %v970_v47 }
 0x317   :  { %v915_v52 = vpop.f32.mrf.mxu0  ;;  %v973_v3 = vpop.f32.mrf.mxu1 }
 0x318   :  { %v916_v48 = vadd.f32 %v915_v52, %v914_v31 }
 0x319   :  { %v949_v51 = vpop.f32.mrf.mxu0  ;;  %v974_v4 = vpop.f32.mrf.mxu1 }
 0x31a   :  { %825 = vrot.lane.b32.xlu0 %v916_v48, %s1126_s17  ;;  %v975_v7 = vadd.f32 %v974_v4, %v973_v3 }
 0x31b   :  { %v950_v28 = vpop.f32.mrf.mxu0 }
 0x31c   :  { %v951_v58 = vadd.f32 %v950_v28, %v949_v51 }
 0x31d   :  { %v952_v33 = vpop.f32.mrf.mxu0 }
 0x31f   :  { %v953_v40 = vpop.f32.mrf.mxu0 }
 0x320   :  { %v954_v45 = vadd.f32 %v953_v40, %v952_v33 }
 0x321   :  { %v955_v39 = vpop.f32.mrf.mxu0 }
 0x322   :  { %785 = vrot.lane.b32.xlu1 %v954_v45, %s1117_s8 }
 0x323   :  { %v956_v0 = vpop.f32.mrf.mxu0 }
 0x324   :  { %v957_v63 = vadd.f32 %v956_v0, %v955_v39 }
 0x326   :  { %791 = vrot.lane.b32.xlu1 %v957_v63, %s1114_s24 }
 0x32a   :  { %815 = vrot.lane.b32.xlu1 %v969_v53, %s1130_s21 }
 0x32e   :  { %821 = vrot.lane.b32.xlu1 %v972_v29, %s1131_s22 }
 0x332   :  { %827 = vrot.lane.b32.xlu1 %v975_v7, %s1126_s17 }
 0x370   :  { %v784_v9 = vpop.permute.xlu0 %783 }
 0x371   :  { %v787_v59 = vadd.f32 %v892_v38, %v784_v9 }
 0x374   :  { %v790_v10 = vpop.permute.xlu0 %789 }
 0x375   :  { %v793_v14 = vadd.f32 %v790_v10, %v787_v59 }
 0x378   :  { %v796_v11 = vpop.permute.xlu0 %795 }
 0x379   :  { %v799_v61 = vadd.f32 %v796_v11, %v793_v14 }
 0x37a   :  { %v798_v5 = vpop.permute.xlu1 %797 }
 0x37c   :  { %v802_v2 = vpop.permute.xlu0 %801 }
 0x37d   :  { %v805_v60 = vadd.f32 %v802_v2, %v799_v61 }
 0x37e   :  { %v804_v12 = vpop.permute.xlu1 %803 }
 0x380   :  { %v808_v13 = vpop.permute.xlu0 %807 }
 0x381   :  { %v811_v16 = vadd.f32 %v808_v13, %v805_v60 }
 0x382   :  { %v810_v57 = vpop.permute.xlu1 %809 }
 0x384   :  { %v814_v49 = vpop.permute.xlu0 %813 }
 0x385   :  { %v817_v17 = vadd.f32 %v814_v49, %v811_v16 }
 0x388   :  { %v820_v8 = vpop.permute.xlu0 %819 }
 0x389   :  { %v823_v18 = vadd.f32 %v820_v8, %v817_v17 }
 0x38c   :  { %v826_v44 = vpop.permute.xlu0 %825 }
 0x38d   :  { %v829_v19 = vadd.f32 %v826_v44, %v823_v18 }
 0x38f   :  { %v838_v20 = vmul.f32 %v857_v6, %v829_v19 }
 0x391   :  { %840 = vst [vmem:[%s1560_s5] sm:$0xff] %v838_v20 }
 0x394   :  { %v786_v15 = vpop.permute.xlu1 %785 }
 0x395   :  { %v788_v37 = vadd.f32 %v951_v58, %v786_v15 }
 0x398   :  { %v792_v21 = vpop.permute.xlu1 %791 }
 0x399   :  { %v794_v22 = vadd.f32 %v792_v21, %v788_v37 }
 0x39b   :  { %v800_v23 = vadd.f32 %v798_v5, %v794_v22 }
 0x39c   :  { %v816_v24 = vpop.permute.xlu1 %815 }
 0x39d   :  { %v806_v25 = vadd.f32 %v804_v12, %v800_v23 }
 0x39f   :  { %v812_v26 = vadd.f32 %v810_v57, %v806_v25 }
 0x3a0   :  { %v822_v27 = vpop.permute.xlu1 %821 }
 0x3a1   :  { %v818_v34 = vadd.f32 %v816_v24, %v812_v26 }
 0x3a3   :  { %v824_v36 = vadd.f32 %v822_v27, %v818_v34 }
 0x3a4   :  { %v828_v30 = vpop.permute.xlu1 %827 }
 0x3a5   :  { %v830_v54 = vadd.f32 %v828_v30, %v824_v36 }
 0x3a7   :  { %v839_v50 = vmul.f32 %v857_v6, %v830_v54 }
 0x3a9   :  { %841 = vst [vmem:[%s1560_s5 + $0x8] sm:$0xff] %v839_v50 }
 0x3aa   :  { %846 = vsyncpa [#allocation3], 1 }
 0x3ab   :  { %847 = vsyncpa [#allocation5], 1 }

</bundles_post_ra>
